<compile_context>
chip_gen: v5e
topology: v5e:2x2
jax: 0.10.0
libtpu: 0.0.40
codegen_flags: <defaults>
</compile_context>

<pallas_src>
import functools

import jax
import jax.numpy as jnp
from jax import lax
from jax.experimental import pallas as pl
from jax.experimental.pallas import tpu as pltpu


def _mha_ln_kernel(xq_ref, xk_ref, xv_ref, wq_ref, wk_ref, wv_ref, wo_ref,
                   bqkv_ref, misc_ref, o_ref, head_slab,
                   *, b_blk, nq, nk, h, d_k, d_v, d_model, eps):
    # Residual input stays f32; a bf16 copy feeds the MXU.
    xq = xq_ref[...]                                   # (b_blk*nq, d_model) f32
    xq_b = xq.astype(jnp.bfloat16)
    xk_b = xk_ref[...].astype(jnp.bfloat16)
    xv_b = xv_ref[...].astype(jnp.bfloat16)

    bqkv = bqkv_ref[...]                               # (1, 2*h*d_k + h*d_v) f32
    bq = bqkv[:, :h * d_k]                             # 1/sqrt(d_k) already folded in
    bk = bqkv[:, h * d_k:2 * h * d_k]
    bv = bqkv[:, 2 * h * d_k:]
    misc = misc_ref[...]                               # (3, d_model) = [bo; gamma; beta]
    bo, gamma, beta = misc[0:1, :], misc[1:2, :], misc[2:3, :]

    # --- Q/K/V projections batched over ALL rows of this block: one bf16 MXU
    #     matmul each, f32 accumulate. ---
    q_all = jnp.dot(xq_b, wq_ref[...], preferred_element_type=jnp.float32) + bq
    k_all = jnp.dot(xk_b, wk_ref[...], preferred_element_type=jnp.float32) + bk
    v_all = jnp.dot(xv_b, wv_ref[...], preferred_element_type=jnp.float32) + bv

    # --- per-(batch, head) attention; statically unrolled (b_blk, h small).
    #     Head outputs land in a VMEM slab at static lane offsets so the output
    #     projection is a single batched matmul (no lane concat).
    # NOTE: full K/V + (nq, nk) f32 scores stay resident; for long sequences
    # (nq/nk >= ~1-2k) switch to a flash-style kv-block loop, especially on
    # v7x's 64 MiB VMEM.
    # TODO(synk): head q/k/v lane slices are not 128-aligned for small d_k/d_v;
    # real configs should pad per-head widths to 128-lane boundaries.
    for b in range(b_blk):
        q_rows = q_all[b * nq:(b + 1) * nq, :]
        k_rows = k_all[b * nk:(b + 1) * nk, :]
        v_rows = v_all[b * nk:(b + 1) * nk, :]
        for hd in range(h):
            q_h = q_rows[:, hd * d_k:(hd + 1) * d_k].astype(jnp.bfloat16)
            k_h = k_rows[:, hd * d_k:(hd + 1) * d_k].astype(jnp.bfloat16)
            v_h = v_rows[:, hd * d_v:(hd + 1) * d_v].astype(jnp.bfloat16)

            # scores = q_h @ k_h^T (contract last dims; no explicit transpose)
            s = lax.dot_general(q_h, k_h, (((1,), (1,)), ((), ())),
                                preferred_element_type=jnp.float32)   # (nq, nk)

            # TODO(synk): attention_mask / attention_weights are None here and
            # dropout on the attention probabilities is identity (eval mode).
            m = jnp.max(s, axis=-1, keepdims=True)
            p = jnp.exp(s - m)
            denom = jnp.sum(p, axis=-1, keepdims=True)
            att = p * pl.reciprocal(denom, approx=True)                # EUP slot

            out_h = jnp.dot(att.astype(jnp.bfloat16), v_h,
                            preferred_element_type=jnp.float32)        # (nq, d_v)
            head_slab[b * nq:(b + 1) * nq, hd * d_v:(hd + 1) * d_v] = (
                out_h.astype(jnp.bfloat16))

    # --- output projection over the whole block, then residual + LayerNorm ---
    out = jnp.dot(head_slab[...], wo_ref[...],
                  preferred_element_type=jnp.float32) + bo             # (rows, d_model)
    # TODO(synk): dropout on the attention output is identity (eval mode).
    xres = xq + out
    mean = jnp.mean(xres, axis=-1, keepdims=True)
    xc = xres - mean
    var = jnp.mean(xc * xc, axis=-1, keepdims=True)
    y = xc * lax.rsqrt(var + eps) * gamma + beta
    o_ref[...] = y.astype(o_ref.dtype)


def _tpu_generation():
    """Best-effort device-kind probe; conservative fallback (1 core, 128 MiB)."""
    try:
        kind = jax.devices()[0].device_kind.lower()
    except Exception:
        kind = ""
    is_v7 = "v7" in kind
    num_cores = 2 if is_v7 else 1          # v7x: 2 TensorCores/chip; v5e/v6e: 1
    vmem_cap = (64 if is_v7 else 128) << 20
    return num_cores, vmem_cap


def multi_head_attention_decoder_self(queries, keys, values, params,
                                      *, h, d_k, d_v, eps=1e-5,
                                      num_batch_blocks=None):
    b_s, nq, d_model = queries.shape
    nk = keys.shape[1]
    # Fail loudly on mismatched configs instead of silently mixing projections.
    assert keys.shape[2] == d_model and values.shape[2] == d_model
    assert values.shape[1] == nk
    assert params['wq'].shape == (d_model, h * d_k)
    assert params['wk'].shape == (d_model, h * d_k)
    assert params['wv'].shape == (d_model, h * d_v)
    assert params['wo'].shape == (h * d_v, d_model)
    # TODO(synk): stateful running_keys/running_values cache (can_be_stateful)
    # is disabled in this configuration and not implemented here.

    num_cores, vmem_cap = _tpu_generation()
    if num_batch_blocks is None:
        num_batch_blocks = num_cores           # 2 on v7x, 1 on v5e/v6e

    num_blocks = max(1, min(num_batch_blocks, b_s))
    b_blk = pl.cdiv(b_s, num_blocks)            # ceil: pad, don't collapse blocks
    # Keep row blocks sublane (8)-aligned; otherwise fall back to one grid step.
    if num_blocks > 1 and ((b_blk * nq) % 8 or (b_blk * nk) % 8):
        num_blocks, b_blk = 1, b_s
    b_pad = num_blocks * b_blk
    if b_pad != b_s:
        pad = ((0, b_pad - b_s), (0, 0), (0, 0))
        queries_p = jnp.pad(queries, pad)
        keys_p = jnp.pad(keys, pad)
        values_p = jnp.pad(values, pad)
    else:
        queries_p, keys_p, values_p = queries, keys, values

    # Lane/sublane-friendly 2-D slabs (rows = batch*seq) -> lane-dense stores.
    xq = queries_p.reshape(b_pad * nq, d_model)
    xk = keys_p.reshape(b_pad * nk, d_model)
    xv = values_p.reshape(b_pad * nk, d_model)

    # bf16 weights for the MXU; 1/sqrt(d_k) folded into the Q projection.
    scale = float(d_k) ** -0.5
    wq = (params['wq'] * scale).astype(jnp.bfloat16)
    wk = params['wk'].astype(jnp.bfloat16)
    wv = params['wv'].astype(jnp.bfloat16)
    wo = params['wo'].astype(jnp.bfloat16)
    b_qkv = jnp.concatenate([params['bq'] * scale, params['bk'], params['bv']],
                            axis=-1).astype(jnp.float32)
    misc = jnp.concatenate([params['bo'], params['gamma'], params['beta']],
                           axis=0).astype(jnp.float32)

    q_rows, kv_rows = b_blk * nq, b_blk * nk

    kernel = functools.partial(_mha_ln_kernel, b_blk=b_blk, nq=nq, nk=nk,
                               h=h, d_k=d_k, d_v=d_v, d_model=d_model, eps=eps)

    # VMEM budget: double-buffered activation/output blocks + bf16 weights +
    # in-kernel working set, with headroom; capped at the physical ceiling.
    act_bytes = (2 * q_rows + 2 * kv_rows) * d_model * 4
    w_bytes = (2 * d_model * h * d_k + d_model * h * d_v + h * d_v * d_model) * 2
    work_bytes = (q_rows * h * d_k + kv_rows * h * (d_k + d_v) + nq * nk) * 4
    slab_bytes = q_rows * h * d_v * 2
    vmem_limit = int(min(vmem_cap,
                         max(32 << 20,
                             2 * (act_bytes + w_bytes) + 2 * work_bytes
                             + slab_bytes + (8 << 20))))

    grid_spec = pltpu.PrefetchScalarGridSpec(
        num_scalar_prefetch=0,
        grid=(num_blocks,),
        in_specs=[
            pl.BlockSpec((q_rows, d_model), lambda i: (i, 0)),
            pl.BlockSpec((kv_rows, d_model), lambda i: (i, 0)),
            pl.BlockSpec((kv_rows, d_model), lambda i: (i, 0)),
            # Grid-invariant operands: constant index_map => fetched once, not
            # re-DMAed across grid steps.
            pl.BlockSpec(wq.shape, lambda i: (0, 0)),
            pl.BlockSpec(wk.shape, lambda i: (0, 0)),
            pl.BlockSpec(wv.shape, lambda i: (0, 0)),
            pl.BlockSpec(wo.shape, lambda i: (0, 0)),
            pl.BlockSpec(b_qkv.shape, lambda i: (0, 0)),
            pl.BlockSpec(misc.shape, lambda i: (0, 0)),
        ],
        out_specs=pl.BlockSpec((q_rows, d_model), lambda i: (i, 0)),
        scratch_shapes=[pltpu.VMEM((q_rows, h * d_v), jnp.bfloat16)],
    )

    out2d = pl.pallas_call(
        kernel,
        out_shape=jax.ShapeDtypeStruct((b_pad * nq, d_model), jnp.float32),
        grid_spec=grid_spec,
        compiler_params=pltpu.CompilerParams(
            dimension_semantics=("parallel",),
            vmem_limit_bytes=vmem_limit),
    )(xq, xk, xv, wq, wk, wv, wo, b_qkv, misc)

    out = out2d.reshape(b_pad, nq, d_model)
    return out[:b_s] if b_pad != b_s else out


def _reference(queries, keys, values, params, *, h, d_k, d_v, eps=1e-5):
    """Pure-JAX f32 reference mirroring the PyTorch forward (eval mode)."""
    b_s, nq, d_model = queries.shape
    nk = keys.shape[1]
    q = (queries @ params['wq'] + params['bq']).reshape(b_s, nq, h, d_k).transpose(0, 2, 1, 3)
    k = (keys @ params['wk'] + params['bk']).reshape(b_s, nk, h, d_k).transpose(0, 2, 3, 1)
    v = (values @ params['wv'] + params['bv']).reshape(b_s, nk, h, d_v).transpose(0, 2, 1, 3)
    att = (q @ k) / jnp.sqrt(jnp.float32(d_k))
    att = jax.nn.softmax(att, axis=-1)
    out = (att @ v).transpose(0, 2, 1, 3).reshape(b_s, nq, h * d_v)
    out = out @ params['wo'] + params['bo']
    x = queries + out
    mean = jnp.mean(x, axis=-1, keepdims=True)
    var = jnp.mean((x - mean) ** 2, axis=-1, keepdims=True)
    return (x - mean) * jax.lax.rsqrt(var + eps) * params['gamma'] + params['beta']


def init_params(key, d_model, d_k, d_v, h):
    ks = jax.random.split(key, 8)

    def lin(kw, kb, fan_in, fan_out):
        bound = 1.0 / jnp.sqrt(fan_in)
        w = jax.random.uniform(kw, (fan_in, fan_out), jnp.float32, -bound, bound)
        b = jax.random.uniform(kb, (1, fan_out), jnp.float32, -bound, bound)
        return w, b

    wq, bq = lin(ks[0], ks[1], d_model, h * d_k)
    wk, bk = lin(ks[2], ks[3], d_model, h * d_k)
    wv, bv = lin(ks[4], ks[5], d_model, h * d_v)
    wo, bo = lin(ks[6], ks[7], h * d_v, d_model)
    return dict(wq=wq, bq=bq, wk=wk, bk=bk, wv=wv, bv=bv, wo=wo, bo=bo,
                gamma=jnp.ones((1, d_model), jnp.float32),
                beta=jnp.zeros((1, d_model), jnp.float32))


if __name__ == "__main__":
    d_model, d_k, d_v, h = 32, 8, 8, 4
    b_s, nq, nk = 2, 8, 8

    key = jax.random.PRNGKey(0)
    kq, kk, kv, kp = jax.random.split(key, 4)
    queries = jax.random.normal(kq, (b_s, nq, d_model), jnp.float32)
    keys = jax.random.normal(kk, (b_s, nk, d_model), jnp.float32)
    values = jax.random.normal(kv, (b_s, nk, d_model), jnp.float32)
    params = init_params(kp, d_model, d_k, d_v, h)

    fwd = jax.jit(functools.partial(multi_head_attention_decoder_self,
                                    h=h, d_k=d_k, d_v=d_v))
    out = jax.block_until_ready(fwd(queries, keys, values, params))

    ref = _reference(queries, keys, values, params, h=h, d_k=d_k, d_v=d_v)
    assert out.shape == (b_s, nq, d_model)
    # Matmuls run on the MXU with bf16 operands (f32 accumulation); softmax and
    # LayerNorm are in f32. bf16 machine eps ~3.9e-3, hence the 1e-2 tolerance
    # against the all-f32 reference.
    assert jnp.allclose(out, ref, atol=1e-2, rtol=1e-2), "mismatch vs JAX reference"

    print("KERNEL_OK")
</pallas_src>

<mosaic_0001>
module attributes {stable_mosaic.version = 11 : i64} {
  func.func @_mha_ln_kernel(%arg0: i32, %arg1: memref<16x32xf32, #tpu.memory_space<vmem>>, %arg2: memref<16x32xf32, #tpu.memory_space<vmem>>, %arg3: memref<16x32xf32, #tpu.memory_space<vmem>>, %arg4: memref<32x32xbf16, #tpu.memory_space<vmem>>, %arg5: memref<32x32xbf16, #tpu.memory_space<vmem>>, %arg6: memref<32x32xbf16, #tpu.memory_space<vmem>>, %arg7: memref<32x32xbf16, #tpu.memory_space<vmem>>, %arg8: memref<1x96xf32, #tpu.memory_space<vmem>>, %arg9: memref<3x32xf32, #tpu.memory_space<vmem>>, %arg10: memref<16x32xf32, #tpu.memory_space<vmem>>, %arg11: memref<16x32xbf16, #tpu.memory_space<vmem>>) attributes {dimension_semantics = [#tpu.dimension_semantics<parallel>], iteration_bounds = array<i64: 1>, scalar_prefetch = 0 : i64, scratch_operands = 1 : i64, tpu.core_type = #tpu.core_type<tc>, window_params = [{transform_indices = @transform_0, window_bounds = array<i64: 16, 32>}, {transform_indices = @transform_1, window_bounds = array<i64: 16, 32>}, {transform_indices = @transform_2, window_bounds = array<i64: 16, 32>}, {pipeline_mode = #tpu.pipeline_mode<synchronous>, transform_indices = @transform_3, window_bounds = array<i64: 32, 32>}, {pipeline_mode = #tpu.pipeline_mode<synchronous>, transform_indices = @transform_4, window_bounds = array<i64: 32, 32>}, {pipeline_mode = #tpu.pipeline_mode<synchronous>, transform_indices = @transform_5, window_bounds = array<i64: 32, 32>}, {pipeline_mode = #tpu.pipeline_mode<synchronous>, transform_indices = @transform_6, window_bounds = array<i64: 32, 32>}, {pipeline_mode = #tpu.pipeline_mode<synchronous>, transform_indices = @transform_7, window_bounds = array<i64: 1, 96>}, {pipeline_mode = #tpu.pipeline_mode<synchronous>, transform_indices = @transform_8, window_bounds = array<i64: 3, 32>}, {transform_indices = @transform_9, window_bounds = array<i64: 16, 32>}]} {
    %c0 = arith.constant 0 : index
    %c0_0 = arith.constant 0 : index
    %0 = vector.load %arg1[%c0, %c0_0] : memref<16x32xf32, #tpu.memory_space<vmem>>, vector<16x32xf32>
    %1 = arith.truncf %0 : vector<16x32xf32> to vector<16x32xbf16>
    %c0_1 = arith.constant 0 : index
    %c0_2 = arith.constant 0 : index
    %2 = vector.load %arg2[%c0_1, %c0_2] : memref<16x32xf32, #tpu.memory_space<vmem>>, vector<16x32xf32>
    %3 = arith.truncf %2 : vector<16x32xf32> to vector<16x32xbf16>
    %c0_3 = arith.constant 0 : index
    %c0_4 = arith.constant 0 : index
    %4 = vector.load %arg3[%c0_3, %c0_4] : memref<16x32xf32, #tpu.memory_space<vmem>>, vector<16x32xf32>
    %5 = arith.truncf %4 : vector<16x32xf32> to vector<16x32xbf16>
    %c0_5 = arith.constant 0 : index
    %c0_6 = arith.constant 0 : index
    %6 = vector.load %arg8[%c0_5, %c0_6] : memref<1x96xf32, #tpu.memory_space<vmem>>, vector<1x96xf32>
    %7 = vector.extract_strided_slice %6 {offsets = [0, 0], sizes = [1, 32], strides = [1, 1]} : vector<1x96xf32> to vector<1x32xf32>
    %8 = vector.extract_strided_slice %6 {offsets = [0, 32], sizes = [1, 32], strides = [1, 1]} : vector<1x96xf32> to vector<1x32xf32>
    %9 = vector.extract_strided_slice %6 {offsets = [0, 64], sizes = [1, 32], strides = [1, 1]} : vector<1x96xf32> to vector<1x32xf32>
    %c0_7 = arith.constant 0 : index
    %c0_8 = arith.constant 0 : index
    %10 = vector.load %arg9[%c0_7, %c0_8] : memref<3x32xf32, #tpu.memory_space<vmem>>, vector<3x32xf32>
    %11 = vector.extract_strided_slice %10 {offsets = [0, 0], sizes = [1, 32], strides = [1, 1]} : vector<3x32xf32> to vector<1x32xf32>
    %12 = vector.extract_strided_slice %10 {offsets = [1, 0], sizes = [1, 32], strides = [1, 1]} : vector<3x32xf32> to vector<1x32xf32>
    %13 = vector.extract_strided_slice %10 {offsets = [2, 0], sizes = [1, 32], strides = [1, 1]} : vector<3x32xf32> to vector<1x32xf32>
    %c0_9 = arith.constant 0 : index
    %c0_10 = arith.constant 0 : index
    %14 = vector.load %arg4[%c0_9, %c0_10] : memref<32x32xbf16, #tpu.memory_space<vmem>>, vector<32x32xbf16>
    %cst = arith.constant dense<0.000000e+00> : vector<16x32xf32>
    %15 = tpu.matmul %1, %14, %cst {dimension_numbers = #tpu.dot_dimension_numbers<[1], [0], [0], [1], [0, 0, 1, 1], [], []>} : vector<16x32xbf16>, vector<32x32xbf16>, vector<16x32xf32> -> vector<16x32xf32>
    %16 = vector.broadcast %7 : vector<1x32xf32> to vector<16x32xf32>
    %17 = arith.addf %15, %16 : vector<16x32xf32>
    %c0_11 = arith.constant 0 : index
    %c0_12 = arith.constant 0 : index
    %18 = vector.load %arg5[%c0_11, %c0_12] : memref<32x32xbf16, #tpu.memory_space<vmem>>, vector<32x32xbf16>
    %cst_13 = arith.constant dense<0.000000e+00> : vector<16x32xf32>
    %19 = tpu.matmul %3, %18, %cst_13 {dimension_numbers = #tpu.dot_dimension_numbers<[1], [0], [0], [1], [0, 0, 1, 1], [], []>} : vector<16x32xbf16>, vector<32x32xbf16>, vector<16x32xf32> -> vector<16x32xf32>
    %20 = vector.broadcast %8 : vector<1x32xf32> to vector<16x32xf32>
    %21 = arith.addf %19, %20 : vector<16x32xf32>
    %c0_14 = arith.constant 0 : index
    %c0_15 = arith.constant 0 : index
    %22 = vector.load %arg6[%c0_14, %c0_15] : memref<32x32xbf16, #tpu.memory_space<vmem>>, vector<32x32xbf16>
    %cst_16 = arith.constant dense<0.000000e+00> : vector<16x32xf32>
    %23 = tpu.matmul %5, %22, %cst_16 {dimension_numbers = #tpu.dot_dimension_numbers<[1], [0], [0], [1], [0, 0, 1, 1], [], []>} : vector<16x32xbf16>, vector<32x32xbf16>, vector<16x32xf32> -> vector<16x32xf32>
    %24 = vector.broadcast %9 : vector<1x32xf32> to vector<16x32xf32>
    %25 = arith.addf %23, %24 : vector<16x32xf32>
    %26 = vector.extract_strided_slice %17 {offsets = [0, 0], sizes = [8, 32], strides = [1, 1]} : vector<16x32xf32> to vector<8x32xf32>
    %27 = vector.extract_strided_slice %21 {offsets = [0, 0], sizes = [8, 32], strides = [1, 1]} : vector<16x32xf32> to vector<8x32xf32>
    %28 = vector.extract_strided_slice %25 {offsets = [0, 0], sizes = [8, 32], strides = [1, 1]} : vector<16x32xf32> to vector<8x32xf32>
    %29 = vector.extract_strided_slice %26 {offsets = [0, 0], sizes = [8, 8], strides = [1, 1]} : vector<8x32xf32> to vector<8x8xf32>
    %30 = arith.truncf %29 : vector<8x8xf32> to vector<8x8xbf16>
    %31 = vector.extract_strided_slice %27 {offsets = [0, 0], sizes = [8, 8], strides = [1, 1]} : vector<8x32xf32> to vector<8x8xf32>
    %32 = arith.truncf %31 : vector<8x8xf32> to vector<8x8xbf16>
    %33 = vector.extract_strided_slice %28 {offsets = [0, 0], sizes = [8, 8], strides = [1, 1]} : vector<8x32xf32> to vector<8x8xf32>
    %34 = arith.truncf %33 : vector<8x8xf32> to vector<8x8xbf16>
    %cst_17 = arith.constant dense<0.000000e+00> : vector<8x8xf32>
    %35 = tpu.matmul %30, %32, %cst_17 {dimension_numbers = #tpu.dot_dimension_numbers<[1], [1], [0], [0], [0, 0, 1, 0], [], []>} : vector<8x8xbf16>, vector<8x8xbf16>, vector<8x8xf32> -> vector<8x8xf32>
    %cst_18 = arith.constant dense<0xFF800000> : vector<8xf32>
    %36 = vector.multi_reduction <maximumf>, %35, %cst_18 [1] : vector<8x8xf32> to vector<8xf32>
    %37 = vector.shape_cast %36 : vector<8xf32> to vector<8x1xf32>
    %38 = vector.broadcast %37 : vector<8x1xf32> to vector<8x8xf32>
    %39 = arith.subf %35, %38 : vector<8x8xf32>
    %40 = math.exp %39 : vector<8x8xf32>
    %cst_19 = arith.constant dense<0.000000e+00> : vector<8xf32>
    %41 = vector.multi_reduction <add>, %40, %cst_19 [1] : vector<8x8xf32> to vector<8xf32>
    %42 = vector.shape_cast %41 : vector<8xf32> to vector<8x1xf32>
    %43 = tpu.reciprocal %42 {approx = true} : vector<8x1xf32> -> vector<8x1xf32>
    %44 = vector.broadcast %43 : vector<8x1xf32> to vector<8x8xf32>
    %45 = arith.mulf %40, %44 : vector<8x8xf32>
    %46 = arith.truncf %45 : vector<8x8xf32> to vector<8x8xbf16>
    %cst_20 = arith.constant dense<0.000000e+00> : vector<8x8xf32>
    %47 = tpu.matmul %46, %34, %cst_20 {dimension_numbers = #tpu.dot_dimension_numbers<[1], [0], [0], [1], [0, 0, 1, 1], [], []>} : vector<8x8xbf16>, vector<8x8xbf16>, vector<8x8xf32> -> vector<8x8xf32>
    %48 = arith.truncf %47 : vector<8x8xf32> to vector<8x8xbf16>
    %c0_21 = arith.constant 0 : index
    %c0_22 = arith.constant 0 : index
    %49 = vector.load %arg11[%c0_21, %c0_22] : memref<16x32xbf16, #tpu.memory_space<vmem>>, vector<8x8xbf16>
    tpu.vector_store %arg11[%c0_21, %c0_22], %48 {strides = array<i32>} : memref<16x32xbf16, #tpu.memory_space<vmem>>, vector<8x8xbf16>,
    %50 = vector.extract_strided_slice %26 {offsets = [0, 8], sizes = [8, 8], strides = [1, 1]} : vector<8x32xf32> to vector<8x8xf32>
    %51 = arith.truncf %50 : vector<8x8xf32> to vector<8x8xbf16>
    %52 = vector.extract_strided_slice %27 {offsets = [0, 8], sizes = [8, 8], strides = [1, 1]} : vector<8x32xf32> to vector<8x8xf32>
    %53 = arith.truncf %52 : vector<8x8xf32> to vector<8x8xbf16>
    %54 = vector.extract_strided_slice %28 {offsets = [0, 8], sizes = [8, 8], strides = [1, 1]} : vector<8x32xf32> to vector<8x8xf32>
    %55 = arith.truncf %54 : vector<8x8xf32> to vector<8x8xbf16>
    %cst_23 = arith.constant dense<0.000000e+00> : vector<8x8xf32>
    %56 = tpu.matmul %51, %53, %cst_23 {dimension_numbers = #tpu.dot_dimension_numbers<[1], [1], [0], [0], [0, 0, 1, 0], [], []>} : vector<8x8xbf16>, vector<8x8xbf16>, vector<8x8xf32> -> vector<8x8xf32>
    %cst_24 = arith.constant dense<0xFF800000> : vector<8xf32>
    %57 = vector.multi_reduction <maximumf>, %56, %cst_24 [1] : vector<8x8xf32> to vector<8xf32>
    %58 = vector.shape_cast %57 : vector<8xf32> to vector<8x1xf32>
    %59 = vector.broadcast %58 : vector<8x1xf32> to vector<8x8xf32>
    %60 = arith.subf %56, %59 : vector<8x8xf32>
    %61 = math.exp %60 : vector<8x8xf32>
    %cst_25 = arith.constant dense<0.000000e+00> : vector<8xf32>
    %62 = vector.multi_reduction <add>, %61, %cst_25 [1] : vector<8x8xf32> to vector<8xf32>
    %63 = vector.shape_cast %62 : vector<8xf32> to vector<8x1xf32>
    %64 = tpu.reciprocal %63 {approx = true} : vector<8x1xf32> -> vector<8x1xf32>
    %65 = vector.broadcast %64 : vector<8x1xf32> to vector<8x8xf32>
    %66 = arith.mulf %61, %65 : vector<8x8xf32>
    %67 = arith.truncf %66 : vector<8x8xf32> to vector<8x8xbf16>
    %cst_26 = arith.constant dense<0.000000e+00> : vector<8x8xf32>
    %68 = tpu.matmul %67, %55, %cst_26 {dimension_numbers = #tpu.dot_dimension_numbers<[1], [0], [0], [1], [0, 0, 1, 1], [], []>} : vector<8x8xbf16>, vector<8x8xbf16>, vector<8x8xf32> -> vector<8x8xf32>
    %69 = arith.truncf %68 : vector<8x8xf32> to vector<8x8xbf16>
    %c0_27 = arith.constant 0 : index
    %c8 = arith.constant 8 : index
    %70 = vector.load %arg11[%c0_27, %c8] : memref<16x32xbf16, #tpu.memory_space<vmem>>, vector<8x8xbf16>
    tpu.vector_store %arg11[%c0_27, %c8], %69 {strides = array<i32>} : memref<16x32xbf16, #tpu.memory_space<vmem>>, vector<8x8xbf16>,
    %71 = vector.extract_strided_slice %26 {offsets = [0, 16], sizes = [8, 8], strides = [1, 1]} : vector<8x32xf32> to vector<8x8xf32>
    %72 = arith.truncf %71 : vector<8x8xf32> to vector<8x8xbf16>
    %73 = vector.extract_strided_slice %27 {offsets = [0, 16], sizes = [8, 8], strides = [1, 1]} : vector<8x32xf32> to vector<8x8xf32>
    %74 = arith.truncf %73 : vector<8x8xf32> to vector<8x8xbf16>
    %75 = vector.extract_strided_slice %28 {offsets = [0, 16], sizes = [8, 8], strides = [1, 1]} : vector<8x32xf32> to vector<8x8xf32>
    %76 = arith.truncf %75 : vector<8x8xf32> to vector<8x8xbf16>
    %cst_28 = arith.constant dense<0.000000e+00> : vector<8x8xf32>
    %77 = tpu.matmul %72, %74, %cst_28 {dimension_numbers = #tpu.dot_dimension_numbers<[1], [1], [0], [0], [0, 0, 1, 0], [], []>} : vector<8x8xbf16>, vector<8x8xbf16>, vector<8x8xf32> -> vector<8x8xf32>
    %cst_29 = arith.constant dense<0xFF800000> : vector<8xf32>
    %78 = vector.multi_reduction <maximumf>, %77, %cst_29 [1] : vector<8x8xf32> to vector<8xf32>
    %79 = vector.shape_cast %78 : vector<8xf32> to vector<8x1xf32>
    %80 = vector.broadcast %79 : vector<8x1xf32> to vector<8x8xf32>
    %81 = arith.subf %77, %80 : vector<8x8xf32>
    %82 = math.exp %81 : vector<8x8xf32>
    %cst_30 = arith.constant dense<0.000000e+00> : vector<8xf32>
    %83 = vector.multi_reduction <add>, %82, %cst_30 [1] : vector<8x8xf32> to vector<8xf32>
    %84 = vector.shape_cast %83 : vector<8xf32> to vector<8x1xf32>
    %85 = tpu.reciprocal %84 {approx = true} : vector<8x1xf32> -> vector<8x1xf32>
    %86 = vector.broadcast %85 : vector<8x1xf32> to vector<8x8xf32>
    %87 = arith.mulf %82, %86 : vector<8x8xf32>
    %88 = arith.truncf %87 : vector<8x8xf32> to vector<8x8xbf16>
    %cst_31 = arith.constant dense<0.000000e+00> : vector<8x8xf32>
    %89 = tpu.matmul %88, %76, %cst_31 {dimension_numbers = #tpu.dot_dimension_numbers<[1], [0], [0], [1], [0, 0, 1, 1], [], []>} : vector<8x8xbf16>, vector<8x8xbf16>, vector<8x8xf32> -> vector<8x8xf32>
    %90 = arith.truncf %89 : vector<8x8xf32> to vector<8x8xbf16>
    %c0_32 = arith.constant 0 : index
    %c16 = arith.constant 16 : index
    %91 = vector.load %arg11[%c0_32, %c16] : memref<16x32xbf16, #tpu.memory_space<vmem>>, vector<8x8xbf16>
    tpu.vector_store %arg11[%c0_32, %c16], %90 {strides = array<i32>} : memref<16x32xbf16, #tpu.memory_space<vmem>>, vector<8x8xbf16>,
    %92 = vector.extract_strided_slice %26 {offsets = [0, 24], sizes = [8, 8], strides = [1, 1]} : vector<8x32xf32> to vector<8x8xf32>
    %93 = arith.truncf %92 : vector<8x8xf32> to vector<8x8xbf16>
    %94 = vector.extract_strided_slice %27 {offsets = [0, 24], sizes = [8, 8], strides = [1, 1]} : vector<8x32xf32> to vector<8x8xf32>
    %95 = arith.truncf %94 : vector<8x8xf32> to vector<8x8xbf16>
    %96 = vector.extract_strided_slice %28 {offsets = [0, 24], sizes = [8, 8], strides = [1, 1]} : vector<8x32xf32> to vector<8x8xf32>
    %97 = arith.truncf %96 : vector<8x8xf32> to vector<8x8xbf16>
    %cst_33 = arith.constant dense<0.000000e+00> : vector<8x8xf32>
    %98 = tpu.matmul %93, %95, %cst_33 {dimension_numbers = #tpu.dot_dimension_numbers<[1], [1], [0], [0], [0, 0, 1, 0], [], []>} : vector<8x8xbf16>, vector<8x8xbf16>, vector<8x8xf32> -> vector<8x8xf32>
    %cst_34 = arith.constant dense<0xFF800000> : vector<8xf32>
    %99 = vector.multi_reduction <maximumf>, %98, %cst_34 [1] : vector<8x8xf32> to vector<8xf32>
    %100 = vector.shape_cast %99 : vector<8xf32> to vector<8x1xf32>
    %101 = vector.broadcast %100 : vector<8x1xf32> to vector<8x8xf32>
    %102 = arith.subf %98, %101 : vector<8x8xf32>
    %103 = math.exp %102 : vector<8x8xf32>
    %cst_35 = arith.constant dense<0.000000e+00> : vector<8xf32>
    %104 = vector.multi_reduction <add>, %103, %cst_35 [1] : vector<8x8xf32> to vector<8xf32>
    %105 = vector.shape_cast %104 : vector<8xf32> to vector<8x1xf32>
    %106 = tpu.reciprocal %105 {approx = true} : vector<8x1xf32> -> vector<8x1xf32>
    %107 = vector.broadcast %106 : vector<8x1xf32> to vector<8x8xf32>
    %108 = arith.mulf %103, %107 : vector<8x8xf32>
    %109 = arith.truncf %108 : vector<8x8xf32> to vector<8x8xbf16>
    %cst_36 = arith.constant dense<0.000000e+00> : vector<8x8xf32>
    %110 = tpu.matmul %109, %97, %cst_36 {dimension_numbers = #tpu.dot_dimension_numbers<[1], [0], [0], [1], [0, 0, 1, 1], [], []>} : vector<8x8xbf16>, vector<8x8xbf16>, vector<8x8xf32> -> vector<8x8xf32>
    %111 = arith.truncf %110 : vector<8x8xf32> to vector<8x8xbf16>
    %c0_37 = arith.constant 0 : index
    %c24 = arith.constant 24 : index
    %112 = vector.load %arg11[%c0_37, %c24] : memref<16x32xbf16, #tpu.memory_space<vmem>>, vector<8x8xbf16>
    tpu.vector_store %arg11[%c0_37, %c24], %111 {strides = array<i32>} : memref<16x32xbf16, #tpu.memory_space<vmem>>, vector<8x8xbf16>,
    %113 = vector.extract_strided_slice %17 {offsets = [8, 0], sizes = [8, 32], strides = [1, 1]} : vector<16x32xf32> to vector<8x32xf32>
    %114 = vector.extract_strided_slice %21 {offsets = [8, 0], sizes = [8, 32], strides = [1, 1]} : vector<16x32xf32> to vector<8x32xf32>
    %115 = vector.extract_strided_slice %25 {offsets = [8, 0], sizes = [8, 32], strides = [1, 1]} : vector<16x32xf32> to vector<8x32xf32>
    %116 = vector.extract_strided_slice %113 {offsets = [0, 0], sizes = [8, 8], strides = [1, 1]} : vector<8x32xf32> to vector<8x8xf32>
    %117 = arith.truncf %116 : vector<8x8xf32> to vector<8x8xbf16>
    %118 = vector.extract_strided_slice %114 {offsets = [0, 0], sizes = [8, 8], strides = [1, 1]} : vector<8x32xf32> to vector<8x8xf32>
    %119 = arith.truncf %118 : vector<8x8xf32> to vector<8x8xbf16>
    %120 = vector.extract_strided_slice %115 {offsets = [0, 0], sizes = [8, 8], strides = [1, 1]} : vector<8x32xf32> to vector<8x8xf32>
    %121 = arith.truncf %120 : vector<8x8xf32> to vector<8x8xbf16>
    %cst_38 = arith.constant dense<0.000000e+00> : vector<8x8xf32>
    %122 = tpu.matmul %117, %119, %cst_38 {dimension_numbers = #tpu.dot_dimension_numbers<[1], [1], [0], [0], [0, 0, 1, 0], [], []>} : vector<8x8xbf16>, vector<8x8xbf16>, vector<8x8xf32> -> vector<8x8xf32>
    %cst_39 = arith.constant dense<0xFF800000> : vector<8xf32>
    %123 = vector.multi_reduction <maximumf>, %122, %cst_39 [1] : vector<8x8xf32> to vector<8xf32>
    %124 = vector.shape_cast %123 : vector<8xf32> to vector<8x1xf32>
    %125 = vector.broadcast %124 : vector<8x1xf32> to vector<8x8xf32>
    %126 = arith.subf %122, %125 : vector<8x8xf32>
    %127 = math.exp %126 : vector<8x8xf32>
    %cst_40 = arith.constant dense<0.000000e+00> : vector<8xf32>
    %128 = vector.multi_reduction <add>, %127, %cst_40 [1] : vector<8x8xf32> to vector<8xf32>
    %129 = vector.shape_cast %128 : vector<8xf32> to vector<8x1xf32>
    %130 = tpu.reciprocal %129 {approx = true} : vector<8x1xf32> -> vector<8x1xf32>
    %131 = vector.broadcast %130 : vector<8x1xf32> to vector<8x8xf32>
    %132 = arith.mulf %127, %131 : vector<8x8xf32>
    %133 = arith.truncf %132 : vector<8x8xf32> to vector<8x8xbf16>
    %cst_41 = arith.constant dense<0.000000e+00> : vector<8x8xf32>
    %134 = tpu.matmul %133, %121, %cst_41 {dimension_numbers = #tpu.dot_dimension_numbers<[1], [0], [0], [1], [0, 0, 1, 1], [], []>} : vector<8x8xbf16>, vector<8x8xbf16>, vector<8x8xf32> -> vector<8x8xf32>
    %135 = arith.truncf %134 : vector<8x8xf32> to vector<8x8xbf16>
    %c8_42 = arith.constant 8 : index
    %c0_43 = arith.constant 0 : index
    %136 = vector.load %arg11[%c8_42, %c0_43] : memref<16x32xbf16, #tpu.memory_space<vmem>>, vector<8x8xbf16>
    tpu.vector_store %arg11[%c8_42, %c0_43], %135 {strides = array<i32>} : memref<16x32xbf16, #tpu.memory_space<vmem>>, vector<8x8xbf16>,
    %137 = vector.extract_strided_slice %113 {offsets = [0, 8], sizes = [8, 8], strides = [1, 1]} : vector<8x32xf32> to vector<8x8xf32>
    %138 = arith.truncf %137 : vector<8x8xf32> to vector<8x8xbf16>
    %139 = vector.extract_strided_slice %114 {offsets = [0, 8], sizes = [8, 8], strides = [1, 1]} : vector<8x32xf32> to vector<8x8xf32>
    %140 = arith.truncf %139 : vector<8x8xf32> to vector<8x8xbf16>
    %141 = vector.extract_strided_slice %115 {offsets = [0, 8], sizes = [8, 8], strides = [1, 1]} : vector<8x32xf32> to vector<8x8xf32>
    %142 = arith.truncf %141 : vector<8x8xf32> to vector<8x8xbf16>
    %cst_44 = arith.constant dense<0.000000e+00> : vector<8x8xf32>
    %143 = tpu.matmul %138, %140, %cst_44 {dimension_numbers = #tpu.dot_dimension_numbers<[1], [1], [0], [0], [0, 0, 1, 0], [], []>} : vector<8x8xbf16>, vector<8x8xbf16>, vector<8x8xf32> -> vector<8x8xf32>
    %cst_45 = arith.constant dense<0xFF800000> : vector<8xf32>
    %144 = vector.multi_reduction <maximumf>, %143, %cst_45 [1] : vector<8x8xf32> to vector<8xf32>
    %145 = vector.shape_cast %144 : vector<8xf32> to vector<8x1xf32>
    %146 = vector.broadcast %145 : vector<8x1xf32> to vector<8x8xf32>
    %147 = arith.subf %143, %146 : vector<8x8xf32>
    %148 = math.exp %147 : vector<8x8xf32>
    %cst_46 = arith.constant dense<0.000000e+00> : vector<8xf32>
    %149 = vector.multi_reduction <add>, %148, %cst_46 [1] : vector<8x8xf32> to vector<8xf32>
    %150 = vector.shape_cast %149 : vector<8xf32> to vector<8x1xf32>
    %151 = tpu.reciprocal %150 {approx = true} : vector<8x1xf32> -> vector<8x1xf32>
    %152 = vector.broadcast %151 : vector<8x1xf32> to vector<8x8xf32>
    %153 = arith.mulf %148, %152 : vector<8x8xf32>
    %154 = arith.truncf %153 : vector<8x8xf32> to vector<8x8xbf16>
    %cst_47 = arith.constant dense<0.000000e+00> : vector<8x8xf32>
    %155 = tpu.matmul %154, %142, %cst_47 {dimension_numbers = #tpu.dot_dimension_numbers<[1], [0], [0], [1], [0, 0, 1, 1], [], []>} : vector<8x8xbf16>, vector<8x8xbf16>, vector<8x8xf32> -> vector<8x8xf32>
    %156 = arith.truncf %155 : vector<8x8xf32> to vector<8x8xbf16>
    %c8_48 = arith.constant 8 : index
    %c8_49 = arith.constant 8 : index
    %157 = vector.load %arg11[%c8_48, %c8_49] : memref<16x32xbf16, #tpu.memory_space<vmem>>, vector<8x8xbf16>
    tpu.vector_store %arg11[%c8_48, %c8_49], %156 {strides = array<i32>} : memref<16x32xbf16, #tpu.memory_space<vmem>>, vector<8x8xbf16>,
    %158 = vector.extract_strided_slice %113 {offsets = [0, 16], sizes = [8, 8], strides = [1, 1]} : vector<8x32xf32> to vector<8x8xf32>
    %159 = arith.truncf %158 : vector<8x8xf32> to vector<8x8xbf16>
    %160 = vector.extract_strided_slice %114 {offsets = [0, 16], sizes = [8, 8], strides = [1, 1]} : vector<8x32xf32> to vector<8x8xf32>
    %161 = arith.truncf %160 : vector<8x8xf32> to vector<8x8xbf16>
    %162 = vector.extract_strided_slice %115 {offsets = [0, 16], sizes = [8, 8], strides = [1, 1]} : vector<8x32xf32> to vector<8x8xf32>
    %163 = arith.truncf %162 : vector<8x8xf32> to vector<8x8xbf16>
    %cst_50 = arith.constant dense<0.000000e+00> : vector<8x8xf32>
    %164 = tpu.matmul %159, %161, %cst_50 {dimension_numbers = #tpu.dot_dimension_numbers<[1], [1], [0], [0], [0, 0, 1, 0], [], []>} : vector<8x8xbf16>, vector<8x8xbf16>, vector<8x8xf32> -> vector<8x8xf32>
    %cst_51 = arith.constant dense<0xFF800000> : vector<8xf32>
    %165 = vector.multi_reduction <maximumf>, %164, %cst_51 [1] : vector<8x8xf32> to vector<8xf32>
    %166 = vector.shape_cast %165 : vector<8xf32> to vector<8x1xf32>
    %167 = vector.broadcast %166 : vector<8x1xf32> to vector<8x8xf32>
    %168 = arith.subf %164, %167 : vector<8x8xf32>
    %169 = math.exp %168 : vector<8x8xf32>
    %cst_52 = arith.constant dense<0.000000e+00> : vector<8xf32>
    %170 = vector.multi_reduction <add>, %169, %cst_52 [1] : vector<8x8xf32> to vector<8xf32>
    %171 = vector.shape_cast %170 : vector<8xf32> to vector<8x1xf32>
    %172 = tpu.reciprocal %171 {approx = true} : vector<8x1xf32> -> vector<8x1xf32>
    %173 = vector.broadcast %172 : vector<8x1xf32> to vector<8x8xf32>
    %174 = arith.mulf %169, %173 : vector<8x8xf32>
    %175 = arith.truncf %174 : vector<8x8xf32> to vector<8x8xbf16>
    %cst_53 = arith.constant dense<0.000000e+00> : vector<8x8xf32>
    %176 = tpu.matmul %175, %163, %cst_53 {dimension_numbers = #tpu.dot_dimension_numbers<[1], [0], [0], [1], [0, 0, 1, 1], [], []>} : vector<8x8xbf16>, vector<8x8xbf16>, vector<8x8xf32> -> vector<8x8xf32>
    %177 = arith.truncf %176 : vector<8x8xf32> to vector<8x8xbf16>
    %c8_54 = arith.constant 8 : index
    %c16_55 = arith.constant 16 : index
    %178 = vector.load %arg11[%c8_54, %c16_55] : memref<16x32xbf16, #tpu.memory_space<vmem>>, vector<8x8xbf16>
    tpu.vector_store %arg11[%c8_54, %c16_55], %177 {strides = array<i32>} : memref<16x32xbf16, #tpu.memory_space<vmem>>, vector<8x8xbf16>,
    %179 = vector.extract_strided_slice %113 {offsets = [0, 24], sizes = [8, 8], strides = [1, 1]} : vector<8x32xf32> to vector<8x8xf32>
    %180 = arith.truncf %179 : vector<8x8xf32> to vector<8x8xbf16>
    %181 = vector.extract_strided_slice %114 {offsets = [0, 24], sizes = [8, 8], strides = [1, 1]} : vector<8x32xf32> to vector<8x8xf32>
    %182 = arith.truncf %181 : vector<8x8xf32> to vector<8x8xbf16>
    %183 = vector.extract_strided_slice %115 {offsets = [0, 24], sizes = [8, 8], strides = [1, 1]} : vector<8x32xf32> to vector<8x8xf32>
    %184 = arith.truncf %183 : vector<8x8xf32> to vector<8x8xbf16>
    %cst_56 = arith.constant dense<0.000000e+00> : vector<8x8xf32>
    %185 = tpu.matmul %180, %182, %cst_56 {dimension_numbers = #tpu.dot_dimension_numbers<[1], [1], [0], [0], [0, 0, 1, 0], [], []>} : vector<8x8xbf16>, vector<8x8xbf16>, vector<8x8xf32> -> vector<8x8xf32>
    %cst_57 = arith.constant dense<0xFF800000> : vector<8xf32>
    %186 = vector.multi_reduction <maximumf>, %185, %cst_57 [1] : vector<8x8xf32> to vector<8xf32>
    %187 = vector.shape_cast %186 : vector<8xf32> to vector<8x1xf32>
    %188 = vector.broadcast %187 : vector<8x1xf32> to vector<8x8xf32>
    %189 = arith.subf %185, %188 : vector<8x8xf32>
    %190 = math.exp %189 : vector<8x8xf32>
    %cst_58 = arith.constant dense<0.000000e+00> : vector<8xf32>
    %191 = vector.multi_reduction <add>, %190, %cst_58 [1] : vector<8x8xf32> to vector<8xf32>
    %192 = vector.shape_cast %191 : vector<8xf32> to vector<8x1xf32>
    %193 = tpu.reciprocal %192 {approx = true} : vector<8x1xf32> -> vector<8x1xf32>
    %194 = vector.broadcast %193 : vector<8x1xf32> to vector<8x8xf32>
    %195 = arith.mulf %190, %194 : vector<8x8xf32>
    %196 = arith.truncf %195 : vector<8x8xf32> to vector<8x8xbf16>
    %cst_59 = arith.constant dense<0.000000e+00> : vector<8x8xf32>
    %197 = tpu.matmul %196, %184, %cst_59 {dimension_numbers = #tpu.dot_dimension_numbers<[1], [0], [0], [1], [0, 0, 1, 1], [], []>} : vector<8x8xbf16>, vector<8x8xbf16>, vector<8x8xf32> -> vector<8x8xf32>
    %198 = arith.truncf %197 : vector<8x8xf32> to vector<8x8xbf16>
    %c8_60 = arith.constant 8 : index
    %c24_61 = arith.constant 24 : index
    %199 = vector.load %arg11[%c8_60, %c24_61] : memref<16x32xbf16, #tpu.memory_space<vmem>>, vector<8x8xbf16>
    tpu.vector_store %arg11[%c8_60, %c24_61], %198 {strides = array<i32>} : memref<16x32xbf16, #tpu.memory_space<vmem>>, vector<8x8xbf16>,
    %c0_62 = arith.constant 0 : index
    %c0_63 = arith.constant 0 : index
    %200 = vector.load %arg11[%c0_62, %c0_63] : memref<16x32xbf16, #tpu.memory_space<vmem>>, vector<16x32xbf16>
    %c0_64 = arith.constant 0 : index
    %c0_65 = arith.constant 0 : index
    %201 = vector.load %arg7[%c0_64, %c0_65] : memref<32x32xbf16, #tpu.memory_space<vmem>>, vector<32x32xbf16>
    %cst_66 = arith.constant dense<0.000000e+00> : vector<16x32xf32>
    %202 = tpu.matmul %200, %201, %cst_66 {dimension_numbers = #tpu.dot_dimension_numbers<[1], [0], [0], [1], [0, 0, 1, 1], [], []>} : vector<16x32xbf16>, vector<32x32xbf16>, vector<16x32xf32> -> vector<16x32xf32>
    %203 = vector.broadcast %11 : vector<1x32xf32> to vector<16x32xf32>
    %204 = arith.addf %202, %203 : vector<16x32xf32>
    %205 = arith.addf %0, %204 : vector<16x32xf32>
    %cst_67 = arith.constant dense<0.000000e+00> : vector<16xf32>
    %206 = vector.multi_reduction <add>, %205, %cst_67 [1] : vector<16x32xf32> to vector<16xf32>
    %207 = vector.shape_cast %206 : vector<16xf32> to vector<16x1xf32>
    %cst_68 = arith.constant 3.200000e+01 : f32
    %208 = vector.broadcast %cst_68 : f32 to vector<16x1xf32>
    %209 = arith.divf %207, %208 : vector<16x1xf32>
    %210 = vector.broadcast %209 : vector<16x1xf32> to vector<16x32xf32>
    %211 = arith.subf %205, %210 : vector<16x32xf32>
    %212 = arith.mulf %211, %211 : vector<16x32xf32>
    %cst_69 = arith.constant dense<0.000000e+00> : vector<16xf32>
    %213 = vector.multi_reduction <add>, %212, %cst_69 [1] : vector<16x32xf32> to vector<16xf32>
    %214 = vector.shape_cast %213 : vector<16xf32> to vector<16x1xf32>
    %cst_70 = arith.constant 3.200000e+01 : f32
    %215 = vector.broadcast %cst_70 : f32 to vector<16x1xf32>
    %216 = arith.divf %214, %215 : vector<16x1xf32>
    %cst_71 = arith.constant 9.99999974E-6 : f32
    %217 = vector.broadcast %cst_71 : f32 to vector<16x1xf32>
    %218 = arith.addf %216, %217 : vector<16x1xf32>
    %219 = math.rsqrt %218 : vector<16x1xf32>
    %220 = vector.broadcast %219 : vector<16x1xf32> to vector<16x32xf32>
    %221 = arith.mulf %211, %220 : vector<16x32xf32>
    %222 = vector.broadcast %12 : vector<1x32xf32> to vector<16x32xf32>
    %223 = arith.mulf %221, %222 : vector<16x32xf32>
    %224 = vector.broadcast %13 : vector<1x32xf32> to vector<16x32xf32>
    %225 = arith.addf %223, %224 : vector<16x32xf32>
    %c0_72 = arith.constant 0 : index
    %c0_73 = arith.constant 0 : index
    %226 = vector.load %arg10[%c0_72, %c0_73] : memref<16x32xf32, #tpu.memory_space<vmem>>, vector<16x32xf32>
    tpu.vector_store %arg10[%c0_72, %c0_73], %225 {strides = array<i32>} : memref<16x32xf32, #tpu.memory_space<vmem>>, vector<16x32xf32>,
    return
  }
  func.func @transform_0(%arg0: i32) -> (i32, i32) {
    %c0_i32 = arith.constant 0 : i32
    %c0_i32_0 = arith.constant 0 : i32
    return %arg0, %c0_i32 : i32, i32
  }
  func.func @transform_1(%arg0: i32) -> (i32, i32) {
    %c0_i32 = arith.constant 0 : i32
    %c0_i32_0 = arith.constant 0 : i32
    return %arg0, %c0_i32 : i32, i32
  }
  func.func @transform_2(%arg0: i32) -> (i32, i32) {
    %c0_i32 = arith.constant 0 : i32
    %c0_i32_0 = arith.constant 0 : i32
    return %arg0, %c0_i32 : i32, i32
  }
  func.func @transform_3(%arg0: i32) -> (i32, i32) {
    %c0_i32 = arith.constant 0 : i32
    %c0_i32_0 = arith.constant 0 : i32
    %c0_i32_1 = arith.constant 0 : i32
    return %c0_i32, %c0_i32_0 : i32, i32
  }
  func.func @transform_4(%arg0: i32) -> (i32, i32) {
    %c0_i32 = arith.constant 0 : i32
    %c0_i32_0 = arith.constant 0 : i32
    %c0_i32_1 = arith.constant 0 : i32
    return %c0_i32, %c0_i32_0 : i32, i32
  }
  func.func @transform_5(%arg0: i32) -> (i32, i32) {
    %c0_i32 = arith.constant 0 : i32
    %c0_i32_0 = arith.constant 0 : i32
    %c0_i32_1 = arith.constant 0 : i32
    return %c0_i32, %c0_i32_0 : i32, i32
  }
  func.func @transform_6(%arg0: i32) -> (i32, i32) {
    %c0_i32 = arith.constant 0 : i32
    %c0_i32_0 = arith.constant 0 : i32
    %c0_i32_1 = arith.constant 0 : i32
    return %c0_i32, %c0_i32_0 : i32, i32
  }
  func.func @transform_7(%arg0: i32) -> (i32, i32) {
    %c0_i32 = arith.constant 0 : i32
    %c0_i32_0 = arith.constant 0 : i32
    %c0_i32_1 = arith.constant 0 : i32
    return %c0_i32, %c0_i32_0 : i32, i32
  }
  func.func @transform_8(%arg0: i32) -> (i32, i32) {
    %c0_i32 = arith.constant 0 : i32
    %c0_i32_0 = arith.constant 0 : i32
    %c0_i32_1 = arith.constant 0 : i32
    return %c0_i32, %c0_i32_0 : i32, i32
  }
  func.func @transform_9(%arg0: i32) -> (i32, i32) {
    %c0_i32 = arith.constant 0 : i32
    %c0_i32_0 = arith.constant 0 : i32
    return %arg0, %c0_i32 : i32, i32
  }
}

</mosaic_0001>

<bundles_post_ra>
// kernel: multi_head_attention_decoder_self.1
= control target key start
LH: loop header
LB: loop body
LE: loop exit
PB: predicated region body
PF: predicated region fallthrough
CT: control target
= control target key end

     0   :  { %s1147_s0 = inlined_call_operand.vmem [shape: f32[16,32], index: 0, kind: input, shape index: {}]   ;;  %s1148_s1 = inlined_call_operand.vmem [shape: f32[16,32], index: 1, kind: input, shape index: {}]   ;;  %s1149_s2 = inlined_call_operand.vmem [shape: f32[16,32], index: 2, kind: input, shape index: {}]   ;;  %s1150_s3 = inlined_call_operand.vmem [shape: bf16[32,32], index: 3, kind: input, shape index: {}]   ;;  %s1151_s4 = inlined_call_operand.vmem [shape: bf16[32,32], index: 4, kind: input, shape index: {}]   ;;  %s1152_s5 = inlined_call_operand.vmem [shape: bf16[32,32], index: 5, kind: input, shape index: {}]   ;;  %s1153_s6 = inlined_call_operand.vmem [shape: bf16[32,32], index: 6, kind: input, shape index: {}]   ;;  %s1154_s7 = inlined_call_operand.vmem [shape: f32[1,96], index: 7, kind: input, shape index: {}]   ;;  %s1155_s8 = inlined_call_operand.vmem [shape: f32[3,32], index: 8, kind: input, shape index: {}]   ;;  %s1156_s9 = inlined_call_operand.hbm [shape: f32[16,32], index: 9, kind: output, shape index: {}]  }
   0x1   :  { %v825_v0 = vld [vmem:[%s1150_s3 + $0x8] sm:$0xff]  ;;  %v824_v2 = vld [vmem:[%s1150_s3] sm:$0xff] }
   0x2   :  { %v827_v1 = vld [vmem:[%s1151_s4 + $0x8] sm:$0xff]  ;;  %v826_v3 = vld [vmem:[%s1151_s4] sm:$0xff]  ;;  %74 = vmatpush.bf16.msra.mxu0 %v825_v0 }
   0x3   :  { %v985_v4 = vld [vmem:[%s1147_s0] sm:$0xff]  ;;  %v990_v5 = vld [vmem:[%s1147_s0 + $0x8] sm:$0xff]  ;;  %110 = vmatpush.bf16.msra.mxu1 %v827_v1 }
   0x4   :  { %v37_v6 = vld [vmem:[%s1148_s1] sm:$0xff]  ;;  %v38_v7 = vld [vmem:[%s1148_s1 + $0x8] sm:$0xff] }
   0x5   :  { %v1001_v8 = vld [vmem:[%s1154_s7] ss:$0 sm:$0xff] }
   0x6   :  { %14 = vsyncpa [#allocation4], 0  ;;  %v36_v9 = vpack.c.bf16 %v990_v5, %v985_v4  ;;  %v39_v10 = vpack.c.bf16 %v38_v7, %v37_v6  ;;  %s909_s0 = smov 96   ;;  %75 = vmatpush.bf16.msra.mxu0 %v824_v2  ;;  %vm64_vm0 = vcmask 261120   ;;  %vm157_vm1 = vcmask 64512   ;;  %s910_s1 = smov 104  }
   0x7   :  { %98 = vrot.lane.b32.xlu0 %v1001_v8, %s909_s0  ;;  %111 = vmatpush.bf16.msra.mxu1 %v826_v3  ;;  %s911_s7 = smov 120   ;;  %s912_s25 = smov 112   ;;  %v829_v25 = vld [vmem:[%s1152_s5 + $0x8] sm:$0xff]  ;;  %v828_v26 = vld [vmem:[%s1152_s5] sm:$0xff]  ;;  %vm192_vm2 = vcmask 1043456   ;;  %vm210_vm3 = vcmask 60416  }
   0x8   :  { %146 = vmatpush.bf16.msra.mxu2 %v829_v25  ;;  %v40_v27 = vld [vmem:[%s1149_s2] sm:$0xff]  ;;  %v41_v28 = vld [vmem:[%s1149_s2 + $0x8] sm:$0xff]  ;;  %s913_s2 = smov 64   ;;  %s914_s5 = smov 8   ;;  %vm276_vm4 = vcmask 126016   ;;  %vm339_vm5 = vcmask 191616  }
   0x9   :  { %776 = vmatmul.msk.bf16.vlgmr.msra.gmra.mxu0 %vm64_vm0, %v36_v9  ;;  %v42_v29 = vpack.c.bf16 %v41_v28, %v40_v27  ;;  %s915_s13 = smov 16   ;;  %s916_s14 = smov 24   ;;  %vm402_vm6 = vcmask 257216  }
   0xa   :  { %785 = vmatmul.msk.bf16.vlgmr.msra.gmra.mxu1 %vm64_vm0, %v39_v10  ;;  %s756_s3 = sshll.u32 %s1156_s9, 4  ;;  %s919_s23 = smov 128   ;;  %s757_s3 = int_to_ptr.hbm [resolvable:$true] %s756_s3 }
   0xc   :  { %147 = vmatpush.bf16.msra.mxu2 %v828_v26 }
   0xf   :  { %794 = vmatmul.msk.bf16.vlgmr.msra.gmra.mxu2 %vm64_vm0, %v42_v29 }
  0x79   :  { %v99_v11 = vpop.permute.xlu0 %98 }
  0x86   :  { %v77_v12 = vpop.f32.mrf.mxu0 }
  0x87   :  { %v113_v13 = vpop.f32.mrf.mxu1  ;;  %v78_v14 = vadd.f32 %v1001_v8, %v77_v12 }
  0x88   :  { %v114_v15 = vadd.f32 %v113_v13, %v99_v11 }
  0x89   :  { %v154_v16 = vpack.c.bf16 %v78_v14, %v78_v14 }
  0x8a   :  { %v155_v17 = vpack.c.bf16 %v114_v15, %v114_v15 }
  0x8b   :  { %213 = vrot.lane.b32.xlu1 %v154_v16, %s911_s7 }
  0x8c   :  { %343 = vrot.lane.b32.xlu2 %v155_v17, %s910_s1  ;;  %216 = vrot.lane.b32.xlu0 %v155_v17, %s911_s7  ;;  %v162_v18 = vsel %vm157_vm1, %v155_v17, 0 }
  0x8d   :  { %171 = vmatpush.bf16.xpose.msra.mxu3 %v162_v18 }
  0x8e   :  { %v79_v19 = vpop.f32.mrf.mxu0 }
  0x8f   :  { %v115_v20 = vpop.f32.mrf.mxu1  ;;  %v80_v21 = vadd.f32 %v1001_v8, %v79_v19 }
  0x90   :  { %v116_v22 = vadd.f32 %v115_v20, %v99_v11 }
  0x91   :  { %v404_v23 = vpack.c.bf16 %v80_v21, %v80_v21 }
  0x92   :  { %v405_v24 = vpack.c.bf16 %v116_v22, %v116_v22  ;;  %v149_v57 = vpop.f32.mrf.mxu2 }
  0x93   :  { %280 = vrot.lane.b32.xlu1 %v155_v17, %s912_s25 }
  0x94   :  { %341 = vrot.lane.b32.xlu0 %v154_v16, %s910_s1  ;;  %278 = vrot.lane.b32.xlu2 %v154_v16, %s912_s25  ;;  %v411_v38 = vsel %vm157_vm1, %v405_v24, 0 }
  0x95   :  { %795 = vmatmul.msk.bf16.vlgmr.msra.gmra.mxu3 %vm157_vm1, %v154_v16 }
  0x9b   :  { %463 = vrot.lane.b32.xlu1 %v405_v24, %s911_s7 }
  0x9c   :  { %526 = vrot.lane.b32.xlu0 %v405_v24, %s912_s25  ;;  %460 = vrot.lane.b32.xlu2 %v404_v23, %s911_s7 }
  0xa3   :  { %588 = vrot.lane.b32.xlu1 %v405_v24, %s910_s1 }
  0xa4   :  { %586 = vrot.lane.b32.xlu0 %v404_v23, %s910_s1  ;;  %524 = vrot.lane.b32.xlu2 %v404_v23, %s912_s25 }
  0xe6   :  { %v344_v30 = vpop.permute.xlu2 %343 }
  0xe7   :  { %v349_v34 = vsel %vm157_vm1, %v344_v30, 0 }
  0xee   :  { %v279_v40 = vpop.permute.xlu2 %278 }
  0xf6   :  { %v461_v49 = vpop.permute.xlu2 %460 }
  0xfd   :  { %v214_v32 = vpop.permute.xlu1 %213 }
  0xfe   :  { %v217_v31 = vpop.permute.xlu0 %216  ;;  %v525_v50 = vpop.permute.xlu2 %524 }
  0xff   :  { %v222_v33 = vsel %vm157_vm1, %v217_v31, 0 }
 0x100   :  { %231 = vmatpush.bf16.xpose.msrb.mxu1 %v222_v33 }
 0x105   :  { %v281_v36 = vpop.permute.xlu1 %280 }
 0x106   :  { %v342_v35 = vpop.permute.xlu0 %341  ;;  %v286_v37 = vsel %vm157_vm1, %v281_v36, 0 }
 0x107   :  { %797 = vmatmul.msk.bf16.vlgmr.msrb.gmra.mxu1 %vm157_vm1, %v214_v32  ;;  %295 = vmatpush.bf16.xpose.msrb.mxu3 %v286_v37 }
 0x108   :  { %358 = vmatpush.bf16.xpose.msra.mxu1 %v349_v34 }
 0x10d   :  { %v464_v42 = vpop.permute.xlu1 %463 }
 0x10e   :  { %v527_v39 = vpop.permute.xlu0 %526  ;;  %v469_v43 = vsel %vm157_vm1, %v464_v42, 0  ;;  %799 = vmatmul.msk.bf16.vlgmr.msrb.gmra.mxu3 %vm157_vm1, %v279_v40 }
 0x10f   :  { %420 = vmatpush.bf16.xpose.msra.mxu3 %v411_v38  ;;  %v532_v41 = vsel %vm157_vm1, %v527_v39, 0 }
 0x110   :  { %478 = vmatpush.bf16.xpose.msrb.mxu1 %v469_v43 }
 0x115   :  { %v589_v44 = vpop.permute.xlu1 %588 }
 0x116   :  { %v594_v45 = vsel %vm157_vm1, %v589_v44, 0  ;;  %v587_v51 = vpop.permute.xlu0 %586 }
 0x117   :  { %541 = vmatpush.bf16.xpose.msrb.mxu3 %v532_v41  ;;  %801 = vmatmul.msk.bf16.vlgmr.msra.gmra.mxu1 %vm157_vm1, %v342_v35 }
 0x118   :  { %v173_v46 = vpop.f32.mrf.mxu3  ;;  %603 = vmatpush.bf16.xpose.msra.mxu1 %v594_v45 }
 0x119   :  { %v177_v47 = vsel %vm157_vm1, %v173_v46, -inf }
 0x11a   :  { %178 = vmax.xlane.f32.xlu2 %v177_v47 }
 0x11e   :  { %803 = vmatmul.msk.bf16.vlgmr.msra.gmra.mxu3 %vm157_vm1, %v404_v23 }
 0x120   :  { %v175_v48 = vpop.f32.mrf.mxu3 }
 0x127   :  { %805 = vmatmul.msk.bf16.vlgmr.msrb.gmra.mxu1 %vm157_vm1, %v461_v49 }
 0x12e   :  { %807 = vmatmul.msk.bf16.vlgmr.msrb.gmra.mxu3 %vm157_vm1, %v525_v50 }
 0x132   :  { %134 = vrot.lane.b32.xlu2 %v1001_v8, %s913_s2 }
 0x137   :  { %809 = vmatmul.msk.bf16.vlgmr.msra.gmra.mxu1 %vm157_vm1, %v587_v51 }
 0x184   :  { %v233_v52 = vpop.f32.mrf.mxu1 }
 0x185   :  { %v237_v14 = vsel %vm157_vm1, %v233_v52, -inf }
 0x18c   :  { %v235_v53 = vpop.f32.mrf.mxu1 }
 0x18d   :  { %v179_v54 = vpop.xlane.xlu2 %178 }
 0x18e   :  { %v180_v9 = vsub.f32 %v173_v46, %v179_v54 }
 0x190   :  { %v181_v12 = vmul.f32 1.442695, %v180_v9 }
 0x191   :  { %v297_v55 = vpop.f32.mrf.mxu3 }
 0x192   :  { %845 = vpow2.f32 %v181_v12  ;;  %v301_v17 = vsel %vm157_vm1, %v297_v55, -inf }
 0x194   :  { %v360_v56 = vpop.f32.mrf.mxu1 }
 0x195   :  { %v1053_v58 = vpop.permute.xlu2 %134  ;;  %v364_v13 = vsel %vm157_vm1, %v360_v56, -inf }
 0x196   :  { %v150_v59 = vadd.f32 %v149_v57, %v1053_v58 }
 0x198   :  { %v1056_v60 = vpack.c.bf16 %v150_v59, %v150_v59  ;;  %v846_v15 = vpop.eup %845 }
 0x199   :  { %v299_v62 = vpop.f32.mrf.mxu3  ;;  %v183_v16 = vsel %vm157_vm1, %v846_v15, 0.0 }
 0x19a   :  { %376 = vrot.lane.b32.xlu0 %v1056_v60, %s910_s1  ;;  %250 = vrot.lane.b32.xlu1 %v1056_v60, %s911_s7  ;;  %v194_v61 = vsel %vm192_vm2, %v1056_v60, 0 }
 0x19b   :  { %203 = vmatpush.bf16.msrb.mxu0 %v194_v61 }
 0x19c   :  { %v362_v63 = vpop.f32.mrf.mxu1 }
 0x1a1   :  { %v422_v0 = vpop.f32.mrf.mxu3 }
 0x1a2   :  { %v426_v19 = vsel %vm157_vm1, %v422_v0, -inf }
 0x1a4   :  { %v1064_v1 = vpop.f32.mrf.mxu1 }
 0x1a5   :  { %v484_v18 = vsel %vm157_vm1, %v1064_v1, -inf }
 0x1a9   :  { %v424_v2 = vpop.f32.mrf.mxu3 }
 0x1ac   :  { %v482_v3 = vpop.f32.mrf.mxu1 }
 0x1b1   :  { %v1066_v6 = vpop.f32.mrf.mxu3 }
 0x1b2   :  { %v547_v8 = vsel %vm157_vm1, %v1066_v6, -inf }
 0x1b3   :  { %548 = vmax.xlane.f32.xlu2 %v547_v8 }
 0x1b4   :  { %v605_v7 = vpop.f32.mrf.mxu1 }
 0x1b5   :  { %v609_v20 = vsel %vm157_vm1, %v605_v7, -inf }
 0x1b9   :  { %v545_v10 = vpop.f32.mrf.mxu3 }
 0x1bc   :  { %v607_v11 = vpop.f32.mrf.mxu1 }
 0x1c4   :  { %365 = vmax.xlane.f32.xlu0 %v364_v13  ;;  %238 = vmax.xlane.f32.xlu1 %v237_v14 }
 0x1cc   :  { %184 = vadd.xlane.f32.xlu0 %v183_v16  ;;  %302 = vmax.xlane.f32.xlu1 %v301_v17 }
 0x1d4   :  { %485 = vmax.xlane.f32.xlu0 %v484_v18  ;;  %427 = vmax.xlane.f32.xlu1 %v426_v19 }
 0x1dc   :  { %610 = vmax.xlane.f32.xlu0 %v609_v20 }
 0x20c   :  { %v377_v21 = vpop.permute.xlu0 %376  ;;  %v251_v22 = vpop.permute.xlu1 %250 }
 0x20d   :  { %v382_v23 = vsel %vm192_vm2, %v377_v21, 0  ;;  %v256_v24 = vsel %vm192_vm2, %v251_v22, 0 }
 0x20e   :  { %265 = vmatpush.bf16.msrb.mxu2 %v256_v24 }
 0x212   :  { %391 = vmatpush.bf16.msra.mxu2 %v382_v23 }
 0x226   :  { %v549_v62 = vpop.xlane.xlu2 %548 }
 0x227   :  { %v550_v63 = vsub.f32 %v1066_v6, %v549_v62 }
 0x229   :  { %v551_v2 = vmul.f32 1.442695, %v550_v63 }
 0x237   :  { %v366_v25 = vpop.xlane.xlu0 %365  ;;  %v239_v26 = vpop.xlane.xlu1 %238 }
 0x238   :  { %v240_v27 = vsub.f32 %v233_v52, %v239_v26  ;;  %v367_v32 = vsub.f32 %v360_v56, %v366_v25 }
 0x23a   :  { %v241_v28 = vmul.f32 1.442695, %v240_v27  ;;  %v368_v37 = vmul.f32 1.442695, %v367_v32 }
 0x23c   :  { %847 = vpow2.f32 %v241_v28 }
 0x23f   :  { %v185_v29 = vpop.xlane.xlu0 %184  ;;  %v303_v30 = vpop.xlane.xlu1 %302 }
 0x240   :  { %849 = vrcp.f32 %v185_v29  ;;  %v304_v31 = vsub.f32 %v297_v55, %v303_v30  ;;  %v151_v55 = vpop.f32.mrf.mxu2 }
 0x241   :  { %v152_v56 = vadd.f32 %v151_v55, %v1053_v58 }
 0x242   :  { %v305_v33 = vmul.f32 1.442695, %v304_v31  ;;  %v848_v34 = vpop.eup %847 }
 0x243   :  { %v243_v35 = vsel %vm157_vm1, %v848_v34, 0.0  ;;  %v406_v57 = vpack.c.bf16 %v152_v56, %v152_v56 }
 0x244   :  { %851 = vpow2.f32 %v305_v33  ;;  %244 = vadd.xlane.f32.xlu1 %v243_v35 }
 0x245   :  { %853 = vpow2.f32 %v368_v37  ;;  %v442_v23 = vsel %vm192_vm2, %v406_v57, 0 }
 0x246   :  { %v850_v36 = vpop.eup %849 }
 0x247   :  { %v187_v38 = vmul.f32 %v850_v36, %v846_v15  ;;  %v486_v39 = vpop.xlane.xlu0 %485  ;;  %v428_v40 = vpop.xlane.xlu1 %427 }
 0x248   :  { %v429_v41 = vsub.f32 %v422_v0, %v428_v40  ;;  %v487_v59 = vsub.f32 %v1064_v1, %v486_v39 }
 0x249   :  { %v188_v42 = vpack.c.bf16 %v187_v38, %v187_v38 }
 0x24a   :  { %v852_v43 = vpop.eup %851  ;;  %v430_v44 = vmul.f32 1.442695, %v429_v41  ;;  %v488_v61 = vmul.f32 1.442695, %v487_v59 }
 0x24b   :  { %796 = vmatmul.msk.bf16.vlgmr.msrb.gmra.mxu0 %vm157_vm1, %v188_v42  ;;  %v307_v45 = vsel %vm157_vm1, %v852_v43, 0.0  ;;  %v854_v47 = vpop.eup %853 }
 0x24c   :  { %308 = vadd.xlane.f32.xlu0 %v307_v45  ;;  %855 = vpow2.f32 %v430_v44  ;;  %v370_v51 = vsel %vm157_vm1, %v854_v47, 0.0 }
 0x24f   :  { %v611_v46 = vpop.xlane.xlu0 %610 }
 0x250   :  { %v612_v48 = vsub.f32 %v605_v7, %v611_v46 }
 0x252   :  { %v613_v49 = vmul.f32 1.442695, %v612_v48  ;;  %v1083_v50 = vpop.eup %855 }
 0x253   :  { %v432_v52 = vsel %vm157_vm1, %v1083_v50, 0.0 }
 0x254   :  { %857 = vpow2.f32 %v613_v49  ;;  %371 = vadd.xlane.f32.xlu0 %v370_v51  ;;  %433 = vadd.xlane.f32.xlu2 %v432_v52 }
 0x255   :  { %859 = vpow2.f32 %v488_v61 }
 0x256   :  { %861 = vpow2.f32 %v551_v2 }
 0x25a   :  { %v1088_v53 = vpop.eup %857 }
 0x25b   :  { %v615_v54 = vsel %vm157_vm1, %v1088_v53, 0.0  ;;  %v860_v0 = vpop.eup %859 }
 0x25c   :  { %616 = vadd.xlane.f32.xlu2 %v615_v54  ;;  %v490_v3 = vsel %vm157_vm1, %v860_v0, 0.0 }
 0x25d   :  { %313 = vrot.lane.b32.xlu1 %v1056_v60, %s912_s25  ;;  %v862_v60 = vpop.eup %861 }
 0x25e   :  { %v553_v58 = vsel %vm157_vm1, %v862_v60, 0.0 }
 0x268   :  { %497 = vrot.lane.b32.xlu0 %v406_v57, %s911_s7 }
 0x274   :  { %621 = vrot.lane.b32.xlu2 %v406_v57, %s910_s1 }
 0x287   :  { %491 = vadd.xlane.f32.xlu1 %v490_v3 }
 0x292   :  { %554 = vadd.xlane.f32.xlu0 %v553_v58 }
 0x2a0   :  { %559 = vrot.lane.b32.xlu1 %v406_v57, %s912_s25 }
 0x2b7   :  { %v245_v7 = vpop.xlane.xlu1 %244 }
 0x2b8   :  { %863 = vrcp.f32 %v245_v7 }
 0x2be   :  { %v864_v1 = vpop.eup %863 }
 0x2bf   :  { %v309_v8 = vpop.xlane.xlu0 %308  ;;  %v247_v9 = vmul.f32 %v864_v1, %v848_v34 }
 0x2c0   :  { %865 = vrcp.f32 %v309_v8  ;;  %v832_v8 = vld [vmem:[%s1153_s6 + $0x8] sm:$0xff] }
 0x2c1   :  { %v248_v10 = vpack.c.bf16 %v247_v9, %v247_v9  ;;  %681 = vmatpush.bf16.msra.mxu3 %v832_v8  ;;  %v831_v9 = vld [vmem:[%s1153_s6] sm:$0xff]  ;;  %s918_s6 = smov [#allocation3]  }
 0x2c3   :  { %798 = vmatmul.msk.bf16.vlgmr.msrb.gmra.mxu2 %vm157_vm1, %v248_v10 }
 0x2c5   :  { %682 = vmatpush.bf16.msra.mxu3 %v831_v9 }
 0x2c6   :  { %v866_v14 = vpop.eup %865 }
 0x2c7   :  { %v372_v6 = vpop.xlane.xlu0 %371  ;;  %v434_v11 = vpop.xlane.xlu2 %433  ;;  %v311_v16 = vmul.f32 %v866_v14, %v852_v43 }
 0x2c8   :  { %867 = vrcp.f32 %v372_v6  ;;  %v205_v12 = vpop.f32.mrf.mxu0 }
 0x2c9   :  { %v209_v13 = vpack.c.bf16 %v205_v12, %v205_v12  ;;  %v312_v24 = vpack.c.bf16 %v311_v16, %v311_v16  ;;  %869 = vrcp.f32 %v434_v11 }
 0x2cb   :  { %211 = vst.msk [vmem:[#allocation2] sm:$0xf] %vm210_vm3, %v209_v13  ;;  %v1130_v13 = vld [vmem:[%s1155_s8] sm:$0x7]  ;;  %s754_s8 = sshll.u32 %s918_s6, 4  ;;  %s755_s8 = int_to_ptr.vmem [resolvable:$true] %s754_s8 }
 0x2cc   :  { %v654_v14 = vperm.slane %v1130_v13, 0 }
 0x2ce   :  { %v868_v15 = vpop.eup %867 }
 0x2cf   :  { %v374_v17 = vmul.f32 %v868_v15, %v854_v47  ;;  %v314_v18 = vpop.permute.xlu1 %313  ;;  %v617_v19 = vpop.xlane.xlu2 %616 }
 0x2d0   :  { %v319_v21 = vsel %vm192_vm2, %v314_v18, 0  ;;  %v207_v22 = vpop.f32.mrf.mxu0  ;;  %v870_v28 = vpop.eup %869 }
 0x2d1   :  { %v375_v20 = vpack.c.bf16 %v374_v17, %v374_v17  ;;  %328 = vmatpush.bf16.msra.mxu0 %v319_v21  ;;  %v436_v30 = vmul.f32 %v870_v28, %v1083_v50 }
 0x2d3   :  { %802 = vmatmul.msk.bf16.vlgmr.msra.gmra.mxu2 %vm157_vm1, %v375_v20  ;;  %v437_v31 = vpack.c.bf16 %v436_v30, %v436_v30 }
 0x2d4   :  { %800 = vmatmul.msk.bf16.vlgmr.msra.gmra.mxu0 %vm157_vm1, %v312_v24 }
 0x2d5   :  { %451 = vmatpush.bf16.msrb.mxu0 %v442_v23  ;;  %v917_v23 = vmov 32.0  }
 0x2d7   :  { %v622_v25 = vpop.permute.xlu2 %621 }
 0x2d8   :  { %v627_v29 = vsel %vm192_vm2, %v622_v25, 0 }
 0x2da   :  { %v498_v26 = vpop.permute.xlu0 %497 }
 0x2db   :  { %v503_v27 = vsel %vm192_vm2, %v498_v26, 0 }
 0x2dc   :  { %512 = vmatpush.bf16.msrb.mxu2 %v503_v27 }
 0x2e0   :  { %636 = vmatpush.bf16.msra.mxu2 %v627_v29 }
 0x2e4   :  { %804 = vmatmul.msk.bf16.vlgmr.msrb.gmra.mxu0 %vm157_vm1, %v437_v31 }
 0x2fa   :  { %v492_v32 = vpop.xlane.xlu1 %491 }
 0x2fb   :  { %871 = vrcp.f32 %v492_v32 }
 0x2fc   :  { %873 = vrcp.f32 %v617_v19 }
 0x301   :  { %v872_v33 = vpop.eup %871 }
 0x302   :  { %v494_v34 = vmul.f32 %v872_v33, %v860_v0  ;;  %v874_v37 = vpop.eup %873 }
 0x303   :  { %v619_v39 = vmul.f32 %v874_v37, %v1088_v53 }
 0x304   :  { %v495_v35 = vpack.c.bf16 %v494_v34, %v494_v34 }
 0x305   :  { %v555_v36 = vpop.xlane.xlu0 %554  ;;  %v620_v43 = vpack.c.bf16 %v619_v39, %v619_v39 }
 0x306   :  { %806 = vmatmul.msk.bf16.vlgmr.msrb.gmra.mxu2 %vm157_vm1, %v495_v35  ;;  %875 = vrcp.f32 %v555_v36 }
 0x307   :  { %877 = vrcp.f32 %v917_v23 }
 0x30c   :  { %v876_v38 = vpop.eup %875 }
 0x30d   :  { %v557_v40 = vmul.f32 %v876_v38, %v862_v60  ;;  %v878_v24 = vpop.eup %877 }
 0x30e   :  { %v698_v25 = vmul.f32 32.0, %v878_v24  ;;  %vm702_vm7 = vweird.f32 %v878_v24 }
 0x30f   :  { %v558_v44 = vpack.c.bf16 %v557_v40, %v557_v40 }
 0x310   :  { %v699_v26 = vsub.f32 1.0, %v698_v25 }
 0x312   :  { %v560_v41 = vpop.permute.xlu1 %559  ;;  %v700_v27 = vmul.f32 %v878_v24, %v699_v26 }
 0x313   :  { %v565_v42 = vsel %vm192_vm2, %v560_v41, 0 }
 0x314   :  { %574 = vmatpush.bf16.msra.mxu0 %v565_v42  ;;  %v701_v28 = vadd.f32 %v878_v24, %v700_v27 }
 0x316   :  { %810 = vmatmul.msk.bf16.vlgmr.msra.gmra.mxu2 %vm157_vm1, %v620_v43  ;;  %v703_v29 = vsel %vm702_vm7, %v878_v24, %v701_v28 }
 0x317   :  { %808 = vmatmul.msk.bf16.vlgmr.msra.gmra.mxu0 %vm157_vm1, %v558_v44 }
 0x346   :  { %v267_v45 = vpop.f32.mrf.mxu2 }
 0x347   :  { %v271_v46 = vpack.c.bf16 %v267_v45, %v267_v45 }
 0x349   :  { %273 = vrot.lane.b32.xlu2 %v271_v46, %s914_s5 }
 0x34e   :  { %v269_v47 = vpop.f32.mrf.mxu2 }
 0x351   :  { %v330_v48 = vpop.f32.mrf.mxu0 }
 0x352   :  { %v334_v49 = vpack.c.bf16 %v330_v48, %v330_v48 }
 0x354   :  { %336 = vrot.lane.b32.xlu0 %v334_v49, %s915_s13 }
 0x356   :  { %v393_v50 = vpop.f32.mrf.mxu2 }
 0x357   :  { %v397_v51 = vpack.c.bf16 %v393_v50, %v393_v50 }
 0x359   :  { %399 = vrot.lane.b32.xlu1 %v397_v51, %s916_s14  ;;  %v332_v52 = vpop.f32.mrf.mxu0 }
 0x35a   :  { %v742_v52 = vperm.slane %v1130_v13, 1 }
 0x35e   :  { %v395_v53 = vpop.f32.mrf.mxu2 }
 0x361   :  { %v453_v54 = vpop.f32.mrf.mxu0 }
 0x362   :  { %v457_v55 = vpack.c.bf16 %v453_v54, %v453_v54 }
 0x364   :  { %458 = vst.msk [vmem:[#allocation2 + $0x4] sm:$0xf] %vm210_vm3, %v457_v55  ;;  %v745_v55 = vperm.slane %v1130_v13, 2 }
 0x369   :  { %v455_v56 = vpop.f32.mrf.mxu0 }
 0x389   :  { %v514_v57 = vpop.f32.mrf.mxu2 }
 0x38a   :  { %v518_v59 = vpack.c.bf16 %v514_v57, %v514_v57 }
 0x38c   :  { %520 = vrot.lane.b32.xlu2 %v518_v59, %s914_s5 }
 0x391   :  { %v516_v61 = vpop.f32.mrf.mxu2 }
 0x394   :  { %v576_v62 = vpop.f32.mrf.mxu0 }
 0x395   :  { %v580_v63 = vpack.c.bf16 %v576_v62, %v576_v62 }
 0x397   :  { %582 = vrot.lane.b32.xlu2 %v580_v63, %s915_s13 }
 0x399   :  { %v638_v0 = vpop.f32.mrf.mxu2 }
 0x39a   :  { %v642_v3 = vpack.c.bf16 %v638_v0, %v638_v0 }
 0x39c   :  { %v578_v2 = vpop.f32.mrf.mxu0 }
 0x39f   :  { %644 = vrot.lane.b32.xlu2 %v642_v3, %s916_s14 }
 0x3a1   :  { %v640_v60 = vpop.f32.mrf.mxu2 }
 0x3a3   :  { %v274_v58 = vpop.permute.xlu2 %273 }
 0x3a4   :  { %277 = vst.msk [vmem:[#allocation2] sm:$0xf] %vm276_vm4, %v274_v58 }
 0x3c6   :  { %v337_v7 = vpop.permute.xlu0 %336 }
 0x3c7   :  { %340 = vst.msk [vmem:[#allocation2] sm:$0xf] %vm339_vm5, %v337_v7 }
 0x3cb   :  { %v400_v1 = vpop.permute.xlu1 %399 }
 0x3cc   :  { %403 = vst.msk [vmem:[#allocation2] sm:$0xf] %vm402_vm6, %v400_v1 }
 0x3e6   :  { %v521_v10 = vpop.permute.xlu2 %520 }
 0x3e7   :  { %523 = vst.msk [vmem:[#allocation2 + $0x4] sm:$0xf] %vm276_vm4, %v521_v10 }
 0x3f1   :  { %v583_v6 = vpop.permute.xlu2 %582 }
 0x3f2   :  { %585 = vst.msk [vmem:[#allocation2 + $0x4] sm:$0xf] %vm339_vm5, %v583_v6 }
 0x3f9   :  { %v645_v11 = vpop.permute.xlu2 %644 }
 0x3fa   :  { %647 = vst.msk [vmem:[#allocation2 + $0x4] sm:$0xf] %vm402_vm6, %v645_v11 }
 0x401   :  { %v830_v12 = vld [vmem:[#allocation2] sm:$0xff] }
 0x402   :  { %823 = vmatmul.msk.bf16.vlgmr.msra.gmra.mxu3 %vm64_vm0, %v830_v12 }
 0x485   :  { %v684_v15 = vpop.f32.mrf.mxu3 }
 0x486   :  { %v685_v16 = vadd.f32 %v684_v15, %v654_v14 }
 0x488   :  { %v689_v17 = vadd.f32 %v685_v16, %v985_v4 }
 0x48a   :  { %v691_v18 = vsel %vm64_vm0, %v689_v17, 0.0 }
 0x48b   :  { %692 = vadd.xlane.f32.xlu1 %v691_v18 }
 0x48d   :  { %v686_v19 = vpop.f32.mrf.mxu3 }
 0x48e   :  { %v687_v20 = vadd.f32 %v686_v19, %v654_v14 }
 0x490   :  { %v690_v21 = vadd.f32 %v687_v20, %v990_v5 }
 0x492   :  { %v694_v22 = vsel %vm64_vm0, %v690_v21, 0.0 }
 0x493   :  { %695 = vadd.xlane.f32.xlu2 %v694_v22 }
 0x4fe   :  { %v693_v4 = vpop.xlane.xlu1 %692 }
 0x4ff   :  { %v704_v30 = vmul.f32 %v703_v29, %v693_v4 }
 0x501   :  { %v706_v31 = vsub.f32 %v689_v17, %v704_v30 }
 0x503   :  { %v708_v32 = vmul.f32 %v706_v31, %v706_v31 }
 0x505   :  { %v710_v33 = vsel %vm64_vm0, %v708_v32, 0.0 }
 0x506   :  { %v696_v34 = vpop.xlane.xlu2 %695  ;;  %711 = vadd.xlane.f32.xlu0 %v710_v33 }
 0x507   :  { %v705_v5 = vmul.f32 %v703_v29, %v696_v34 }
 0x509   :  { %v707_v35 = vsub.f32 %v690_v21, %v705_v5 }
 0x50b   :  { %v709_v36 = vmul.f32 %v707_v35, %v707_v35 }
 0x50d   :  { %v713_v37 = vsel %vm64_vm0, %v709_v36, 0.0 }
 0x50e   :  { %714 = vadd.xlane.f32.xlu1 %v713_v37 }
 0x579   :  { %v712_v38 = vpop.xlane.xlu0 %711 }
 0x57a   :  { %v716_v39 = vmul.f32 %v712_v38, %v703_v29 }
 0x57c   :  { %v718_v40 = vadd.f32 1e-05, %v716_v39 }
 0x57e   :  { %879 = vrsqrt.f32 %v718_v40  ;;  %vm726_vm9 = vweird.f32 %v718_v40 }
 0x581   :  { %v715_v41 = vpop.xlane.xlu1 %714 }
 0x582   :  { %v717_v42 = vmul.f32 %v715_v41, %v703_v29 }
 0x584   :  { %v880_v43 = vpop.eup %879  ;;  %v719_v44 = vadd.f32 1e-05, %v717_v42 }
 0x585   :  { %v721_v45 = vmul.f32 %v880_v43, %v718_v40  ;;  %vm727_vm8 = vweird.f32 %v880_v43 }
 0x586   :  { %881 = vrsqrt.f32 %v719_v44  ;;  %vm728_vm10 = vmor %vm726_vm9, %vm727_vm8  ;;  %vm736_vm12 = vweird.f32 %v719_v44 }
 0x587   :  { %v722_v46 = vmul.f32 %v880_v43, %v721_v45 }
 0x589   :  { %v723_v47 = vmul.f32 0.5, %v722_v46 }
 0x58b   :  { %v724_v48 = vsub.f32 1.5, %v723_v47 }
 0x58c   :  { %v882_v49 = vpop.eup %881 }
 0x58d   :  { %v725_v50 = vmul.f32 %v880_v43, %v724_v48  ;;  %v731_v51 = vmul.f32 %v882_v49, %v719_v44  ;;  %vm737_vm11 = vweird.f32 %v882_v49 }
 0x58e   :  { %vm738_vm13 = vmor %vm736_vm12, %vm737_vm11 }
 0x58f   :  { %v729_v53 = vsel %vm728_vm10, %v880_v43, %v725_v50  ;;  %v732_v54 = vmul.f32 %v882_v49, %v731_v51 }
 0x590   :  { %v740_v56 = vmul.f32 %v729_v53, %v706_v31 }
 0x591   :  { %v733_v57 = vmul.f32 0.5, %v732_v54 }
 0x592   :  { %v743_v59 = vmul.f32 %v742_v52, %v740_v56 }
 0x593   :  { %v734_v61 = vsub.f32 1.5, %v733_v57 }
 0x594   :  { %v746_v62 = vadd.f32 %v745_v55, %v743_v59 }
 0x595   :  { %v735_v63 = vmul.f32 %v882_v49, %v734_v61 }
 0x596   :  { %748 = vst.msk [vmem:[#allocation3] sm:$0xff] %vm64_vm0, %v746_v62 }
 0x597   :  { %v739_v0 = vsel %vm738_vm13, %v882_v49, %v735_v63 }
 0x598   :  { %v741_v2 = vmul.f32 %v739_v0, %v707_v35 }
 0x59a   :  { %v744_v3 = vmul.f32 %v742_v52, %v741_v2 }
 0x59c   :  { %v747_v60 = vadd.f32 %v745_v55, %v744_v3 }
 0x59e   :  { %749 = vst.msk [vmem:[#allocation3 + $0x8] sm:$0xff] %vm64_vm0, %v747_v60 }
 0x59f   :  { %762 = dma.vmem_to_hbm [thread:$0]  %s755_s8, 256, %s757_s3, [#allocation4], %s919_s23, %s919_s23, %s914_s5  }
 0x5a0   :  { %907 = dma.done.wait [#allocation4], 256  }
 0x5a1   :  { %908 = vsyncadd [#allocation4], 4294967040 }
 0x5a2   :  { %767 = vsyncpa [#allocation4], 1 }

</bundles_post_ra>
